<compile_context>
chip_gen: v7x
topology: tpu7x:2x2x1
jax: 0.10.0
libtpu: 0.0.40
codegen_flags: <defaults>
</compile_context>

<pallas_src>
import jax
import jax.numpy as jnp
from jax.experimental import pallas as pl
from jax.experimental.pallas import tpu as pltpu


# ----------------------------------------------------------------------------
# Fused kernel: tiled matmul (bf16 operands, f32 accumulate) + loss-stat epilogue
# ----------------------------------------------------------------------------
def _fused_linear_stats_kernel(x_ref, w_ref, o_ref, stats_ref, acc_ref):
    k = pl.program_id(2)

    @pl.when(k == 0)
    def _init():
        acc_ref[...] = jnp.zeros_like(acc_ref)

    acc_ref[...] += jnp.dot(
        x_ref[...], w_ref[...], preferred_element_type=jnp.float32
    )

    @pl.when(k == pl.num_programs(2) - 1)
    def _finalize():
        y = acc_ref[...]                                   # (tm, tn) f32 tile of the output
        o_ref[...] = y.astype(o_ref.dtype)
        # Per-tile column-wise partial sums (sublane reduce), kept lane-dense (tn lanes).
        s_sq   = jnp.sum(y * y,               axis=0, keepdims=True)   # (1, tn)
        s_abs  = jnp.sum(jnp.abs(y),          axis=0, keepdims=True)
        s_sum  = jnp.sum(y,                   axis=0, keepdims=True)
        s_relu = jnp.sum(jnp.maximum(y, 0.0), axis=0, keepdims=True)
        stats_ref[...] = jnp.concatenate([s_sq, s_abs, s_sum, s_relu], axis=0)  # (4, tn)


def fused_linear_with_stats(x, w, *, tm=128, tn=128, tk=128):
    M, K = x.shape
    K2, N = w.shape
    assert K == K2
    assert M % tm == 0 and N % tn == 0 and K % tk == 0
    gm, gn, gk = M // tm, N // tn, K // tk

    # bf16 operands hit the fast MXU path on v5e/v6e/v7x; accumulation stays f32.
    xb = x.astype(jnp.bfloat16)
    wb = w.astype(jnp.bfloat16)

    y, stats = pl.pallas_call(
        _fused_linear_stats_kernel,
        out_shape=(
            jax.ShapeDtypeStruct((M, N), jnp.float32),
            jax.ShapeDtypeStruct((gm, gn, 4, tn), jnp.float32),   # per-tile partial sums
        ),
        grid_spec=pltpu.PrefetchScalarGridSpec(
            num_scalar_prefetch=0,
            grid=(gm, gn, gk),
            in_specs=[
                pl.BlockSpec((tm, tk), lambda i, j, k: (i, k)),
                pl.BlockSpec((tk, tn), lambda i, j, k: (k, j)),
            ],
            out_specs=(
                pl.BlockSpec((tm, tn), lambda i, j, k: (i, j)),
                pl.BlockSpec((None, None, 4, tn), lambda i, j, k: (i, j, 0, 0)),
            ),
            scratch_shapes=[pltpu.VMEM((tm, tn), jnp.float32)],
        ),
        compiler_params=pltpu.CompilerParams(
            dimension_semantics=("parallel", "parallel", "arbitrary"),
            vmem_limit_bytes=32 * 1024 * 1024,   # conservative; fits v5e/v6e/v7x scoped VMEM
        ),
    )(xb, wb)
    return y, stats


def losses_from_stats(stats, n_elems):
    """Finish the fused per-tile partial sums into the four scalar demo losses."""
    s = stats.sum(axis=(0, 1, 3))                 # (4,)  tiny plain-jnp finish
    mean_sq, mean_abs, mean_y, mean_relu = s / n_elems
    var = mean_sq - mean_y * mean_y               # population variance (ddof=0)
    return [mean_sq, mean_abs, var, mean_relu]


# ----------------------------------------------------------------------------
# LearnableLoss wrapper (plain-Python glue, mirroring the nn.Module)
# ----------------------------------------------------------------------------
class LearnableLossPallas:
    # TODO(synk): the PyTorch module wraps an arbitrary nn.Module as `self.model`; only a
    # Linear model is translated here (a generic submodule has no single Pallas equivalent).

    def __init__(self, model_weight, loss_names, weight_offsets=None):
        self.model_weight = model_weight
        self.loss_names = list(loss_names)
        # nn.Parameter(torch.zeros(len(loss_names)))
        self.eta = jnp.zeros(len(loss_names), dtype=jnp.float32)
        if weight_offsets is None:
            weight_offsets = [1.0] * len(loss_names)
        self.weight_offsets = jnp.asarray(weight_offsets, dtype=jnp.float32)

    def get_loss_names(self):
        return self.loss_names

    def forward(self, x):
        y, _ = fused_linear_with_stats(x, self.model_weight)
        return y

    def forward_with_stats(self, x):
        return fused_linear_with_stats(x, self.model_weight)

    def get_total_loss(self, losses):
        # Plain jnp: a 4-element combine as a Pallas kernel is pure launch/DMA overhead.
        loss_vec = jnp.stack(losses, axis=0).astype(jnp.float32)
        weighted = loss_vec * self.weight_offsets * jnp.exp(-self.eta) + self.eta
        total = weighted.sum()
        # meta built from device arrays: no per-element float() host syncs, autodiff-safe.
        scaled = loss_vec * self.weight_offsets      # matches PyTorch meta (no exp(-eta) factor)
        meta = {"loss": {}, "eta": {}}
        for i, name in enumerate(self.loss_names):
            meta["loss"][name] = scaled[i]
            meta["eta"][name] = self.eta[i]
        meta["loss"]["total"] = total
        return total, meta


# ----------------------------------------------------------------------------
# Demo / smoke test
# ----------------------------------------------------------------------------
if __name__ == "__main__":
    key = jax.random.PRNGKey(0)
    kx, kw = jax.random.split(key)

    M, K, N = 256, 256, 256                  # small linear "model": (M,K) @ (K,N)
    x = jax.random.normal(kx, (M, K), dtype=jnp.float32)
    w = 0.02 * jax.random.normal(kw, (K, N), dtype=jnp.float32)

    loss_names = ["recon", "kl", "aux", "reg"]
    weight_offsets = [1.0, 0.5, 2.0, 1.5]
    ll = LearnableLossPallas(w, loss_names, weight_offsets)

    # One fused Pallas call: model forward + loss-statistics epilogue.
    y, stats = ll.forward_with_stats(x)
    y = jax.block_until_ready(y)

    losses = losses_from_stats(stats, M * N)
    total, meta = ll.get_total_loss(losses)
    total = jax.block_until_ready(total)

    # --- reference checks against plain JAX ---
    y_ref = jnp.dot(x.astype(jnp.bfloat16), w.astype(jnp.bfloat16),
                    preferred_element_type=jnp.float32)
    assert jnp.allclose(y, y_ref, rtol=1e-3, atol=1e-3), "matmul mismatch"

    ref_losses = [jnp.mean(y ** 2), jnp.mean(jnp.abs(y)),
                  jnp.var(y), jnp.mean(jax.nn.relu(y))]
    for got, ref in zip(losses, ref_losses):
        assert jnp.allclose(got, ref, rtol=1e-3, atol=1e-5), (got, ref)

    ref_total = jnp.sum(jnp.stack(ref_losses) * ll.weight_offsets
                        * jnp.exp(-ll.eta) + ll.eta)
    assert jnp.allclose(total, ref_total, rtol=1e-3, atol=1e-5), (total, ref_total)

    print("KERNEL_OK")
</pallas_src>

<mosaic_0001>
module attributes {stable_mosaic.version = 11 : i64} {
  func.func @_fused_linear_stats_kernel(%arg0: i32, %arg1: i32, %arg2: i32, %arg3: memref<128x128xbf16, #tpu.memory_space<vmem>>, %arg4: memref<128x128xbf16, #tpu.memory_space<vmem>>, %arg5: memref<128x128xf32, #tpu.memory_space<vmem>>, %arg6: memref<1x1x4x128xf32, #tpu.memory_space<vmem>>, %arg7: memref<128x128xf32, #tpu.memory_space<vmem>>) attributes {dimension_semantics = [#tpu.dimension_semantics<parallel>, #tpu.dimension_semantics<parallel>, #tpu.dimension_semantics<arbitrary>], iteration_bounds = array<i64: 2, 2, 2>, scalar_prefetch = 0 : i64, scratch_operands = 1 : i64, tpu.core_type = #tpu.core_type<tc>, window_params = [{transform_indices = @transform_0, window_bounds = array<i64: 128, 128>}, {transform_indices = @transform_1, window_bounds = array<i64: 128, 128>}, {transform_indices = @transform_2, window_bounds = array<i64: 128, 128>}, {transform_indices = @transform_3, window_bounds = array<i64: 1, 1, 4, 128>}]} {
    %c0_i32 = arith.constant 0 : i32
    %0 = arith.cmpi eq, %arg2, %c0_i32 : i32
    %1 = arith.extui %0 : i1 to i32
    %c0_i32_0 = arith.constant 0 : i32
    %2 = arith.cmpi ne, %1, %c0_i32_0 : i32
    scf.if %2 {
      %cst_9 = arith.constant 0.000000e+00 : f32
      %12 = vector.broadcast %cst_9 : f32 to vector<128x128xf32>
      %c0_10 = arith.constant 0 : index
      %c0_11 = arith.constant 0 : index
      %13 = vector.load %arg7[%c0_10, %c0_11] : memref<128x128xf32, #tpu.memory_space<vmem>>, vector<128x128xf32>
      tpu.vector_store %arg7[%c0_10, %c0_11], %12 {strides = array<i32>} : memref<128x128xf32, #tpu.memory_space<vmem>>, vector<128x128xf32>,
    } else {
    }
    %c0 = arith.constant 0 : index
    %c0_1 = arith.constant 0 : index
    %3 = vector.load %arg7[%c0, %c0_1] : memref<128x128xf32, #tpu.memory_space<vmem>>, vector<128x128xf32>
    %c0_2 = arith.constant 0 : index
    %c0_3 = arith.constant 0 : index
    %4 = vector.load %arg3[%c0_2, %c0_3] : memref<128x128xbf16, #tpu.memory_space<vmem>>, vector<128x128xbf16>
    %c0_4 = arith.constant 0 : index
    %c0_5 = arith.constant 0 : index
    %5 = vector.load %arg4[%c0_4, %c0_5] : memref<128x128xbf16, #tpu.memory_space<vmem>>, vector<128x128xbf16>
    %cst = arith.constant dense<0.000000e+00> : vector<128x128xf32>
    %6 = tpu.matmul %4, %5, %cst {dimension_numbers = #tpu.dot_dimension_numbers<[1], [0], [0], [1], [0, 0, 1, 1], [], []>} : vector<128x128xbf16>, vector<128x128xbf16>, vector<128x128xf32> -> vector<128x128xf32>
    %7 = arith.addf %3, %6 : vector<128x128xf32>
    %c0_6 = arith.constant 0 : index
    %c0_7 = arith.constant 0 : index
    %8 = vector.load %arg7[%c0_6, %c0_7] : memref<128x128xf32, #tpu.memory_space<vmem>>, vector<128x128xf32>
    tpu.vector_store %arg7[%c0_6, %c0_7], %7 {strides = array<i32>} : memref<128x128xf32, #tpu.memory_space<vmem>>, vector<128x128xf32>,
    %c1_i32 = arith.constant 1 : i32
    %9 = arith.cmpi eq, %arg2, %c1_i32 : i32
    %10 = arith.extui %9 : i1 to i32
    %c0_i32_8 = arith.constant 0 : i32
    %11 = arith.cmpi ne, %10, %c0_i32_8 : i32
    scf.if %11 {
      %c0_9 = arith.constant 0 : index
      %c0_10 = arith.constant 0 : index
      %12 = vector.load %arg7[%c0_9, %c0_10] : memref<128x128xf32, #tpu.memory_space<vmem>>, vector<128x128xf32>
      %c0_11 = arith.constant 0 : index
      %c0_12 = arith.constant 0 : index
      %13 = vector.load %arg5[%c0_11, %c0_12] : memref<128x128xf32, #tpu.memory_space<vmem>>, vector<128x128xf32>
      tpu.vector_store %arg5[%c0_11, %c0_12], %12 {strides = array<i32>} : memref<128x128xf32, #tpu.memory_space<vmem>>, vector<128x128xf32>,
      %14 = arith.mulf %12, %12 : vector<128x128xf32>
      %cst_13 = arith.constant dense<0.000000e+00> : vector<128xf32>
      %15 = vector.multi_reduction <add>, %14, %cst_13 [0] : vector<128x128xf32> to vector<128xf32>
      %16 = vector.shape_cast %15 : vector<128xf32> to vector<1x128xf32>
      %17 = math.absf %12 : vector<128x128xf32>
      %cst_14 = arith.constant dense<0.000000e+00> : vector<128xf32>
      %18 = vector.multi_reduction <add>, %17, %cst_14 [0] : vector<128x128xf32> to vector<128xf32>
      %19 = vector.shape_cast %18 : vector<128xf32> to vector<1x128xf32>
      %cst_15 = arith.constant dense<0.000000e+00> : vector<128xf32>
      %20 = vector.multi_reduction <add>, %12, %cst_15 [0] : vector<128x128xf32> to vector<128xf32>
      %21 = vector.shape_cast %20 : vector<128xf32> to vector<1x128xf32>
      %cst_16 = arith.constant 0.000000e+00 : f32
      %22 = vector.broadcast %cst_16 : f32 to vector<128x128xf32>
      %23 = arith.maximumf %12, %22 : vector<128x128xf32>
      %cst_17 = arith.constant dense<0.000000e+00> : vector<128xf32>
      %24 = vector.multi_reduction <add>, %23, %cst_17 [0] : vector<128x128xf32> to vector<128xf32>
      %25 = vector.shape_cast %24 : vector<128xf32> to vector<1x128xf32>
      %26 = tpu.concatenate %16, %19, %21, %25 in 0 : vector<1x128xf32>, vector<1x128xf32>, vector<1x128xf32>, vector<1x128xf32> -> vector<4x128xf32>
      %c0_18 = arith.constant 0 : index
      %c0_19 = arith.constant 0 : index
      %c0_20 = arith.constant 0 : index
      %c0_21 = arith.constant 0 : index
      %27 = vector.load %arg6[%c0_18, %c0_19, %c0_20, %c0_21] : memref<1x1x4x128xf32, #tpu.memory_space<vmem>>, vector<1x1x4x128xf32>
      %28 = vector.shape_cast %27 : vector<1x1x4x128xf32> to vector<4x128xf32>
      %29 = vector.shape_cast %26 : vector<4x128xf32> to vector<1x1x4x128xf32>
      tpu.vector_store %arg6[%c0_18, %c0_19, %c0_20, %c0_21], %29 {strides = array<i32>} : memref<1x1x4x128xf32, #tpu.memory_space<vmem>>, vector<1x1x4x128xf32>,
    } else {
    }
    return
  }
  func.func @transform_0(%arg0: i32, %arg1: i32, %arg2: i32) -> (i32, i32) {
    %c0_i32 = arith.constant 0 : i32
    return %arg0, %arg2 : i32, i32
  }
  func.func @transform_1(%arg0: i32, %arg1: i32, %arg2: i32) -> (i32, i32) {
    %c0_i32 = arith.constant 0 : i32
    return %arg2, %arg1 : i32, i32
  }
  func.func @transform_2(%arg0: i32, %arg1: i32, %arg2: i32) -> (i32, i32) {
    %c0_i32 = arith.constant 0 : i32
    return %arg0, %arg1 : i32, i32
  }
  func.func @transform_3(%arg0: i32, %arg1: i32, %arg2: i32) -> (i32, i32, i32, i32) {
    %c0_i32 = arith.constant 0 : i32
    %c0_i32_0 = arith.constant 0 : i32
    %c0_i32_1 = arith.constant 0 : i32
    return %arg0, %arg1, %c0_i32, %c0_i32_0 : i32, i32, i32, i32
  }
}

</mosaic_0001>

<bundles_post_ra>
// kernel: tpu_custom_call.1
= control target key start
LH: loop header
LB: loop body
LE: loop exit
PB: predicated region body
PF: predicated region fallthrough
CT: control target
= control target key end

     0   :  { %s2045_s0 = inlined_call_operand.hbm [shape: bf16[256,256], index: 0, kind: input, shape index: {}]   ;;  %s2046_s1 = inlined_call_operand.hbm [shape: bf16[256,256], index: 1, kind: input, shape index: {}]   ;;  %s2047_s2 = inlined_call_operand.hbm [shape: f32[256,256], index: 2, kind: output, shape index: {0}]   ;;  %s2048_s3 = inlined_call_operand.hbm [shape: f32[2,2,4,128], index: 3, kind: output, shape index: {1}]  }
   0x1   :  { %2073 = sst [smem:[#allocation26_spill]] %s2045_s0 }
   0x2   :  { %2074 = sst [smem:[#allocation27_spill]] %s2046_s1 }
   0x3   :  { %2075 = sst [smem:[#allocation28_spill]] %s2047_s2 }
   0x4   :  { %2076 = sst [smem:[#allocation29_spill]] %s2048_s3 }
   0x5   :  { %9 = vsyncpa [#allocation4], 0 }
   0x6   :  { %11 = vsyncpa [#allocation4 + $0x1], 0 }
   0x7   :  { %12 = vsyncpa [#allocation7], 0 }
   0x8   :  { %14 = vsyncpa [#allocation7 + $0x1], 0 }
   0x9   :  { %15 = vsyncpa [#allocation5], 0 }
   0xa   :  { %17 = vsyncpa [#allocation5 + $0x1], 0 }
   0xb   :  { %18 = vsyncpa [#allocation10], 0 }
   0xc   :  { %20 = vsyncpa [#allocation10 + $0x1], 0  ;;  %s1509_s12 = smov 0   ;;  %s1511_s13 = smov 0  }
   0xd   :  { %s1513_s14 = smov 0   ;;  %s1515_s15 = smov 0  }
   0xe   :  { %s1517_s16 = smov 0   ;;  %s1519_s17 = smov 0  }
   0xf   :  { %s1521_s18 = smov 0   ;;  %s1523_s19 = smov 0  }
  0x10   :  { %s1525_s20 = smov 0   ;;  %s1527_s21 = smov 0  }
  0x11   :  { %s1529_s22 = smov 0   ;;  %s1531_s23 = smov 0  }
  0x12   :  { %s1533_s24 = smov 0   ;;  %s1535_s25 = smov 0  }
  0x13   :  { %s1537_s26 = smov 0   ;;  %s1539_s27 = smov 0  }
  0x14 LB: > { %2077 = sst [smem:[#allocation15_spill]] %s1444_s19  ;;  %s38_s28 = sadd.s32 1, %s1464_s24  ;;  %s1476_s27 = sphi %s1539_s27, %s26_s27   ;;  %s1472_s26 = sphi %s1537_s26, %s2127_s26   ;;  %s1468_s25 = sphi %s1535_s25, %s2126_s25   ;;  %s1464_s24 = sphi %s1533_s24, %s2136_s24   ;;  %s1460_s23 = sphi %s1531_s23, %s2124_s23   ;;  %s1456_s22 = sphi %s1529_s22, %s2123_s22   ;;  %s1452_s21 = sphi %s1527_s21, %s2135_s21   ;;  %s1448_s20 = sphi %s1525_s20, %s2121_s20   ;;  %s1444_s19 = sphi %s1523_s19, %s2120_s19   ;;  %s1440_s18 = sphi %s1521_s18, %s2119_s18   ;;  %s1436_s17 = sphi %s1519_s17, %s2134_s17   ;;  %s1432_s16 = sphi %s1517_s16, %s2133_s16   ;;  %s1428_s15 = sphi %s1515_s15, %s2132_s15   ;;  %s1424_s14 = sphi %s1513_s14, %s2131_s14   ;;  %s1420_s13 = sphi %s1511_s13, %s2130_s13   ;;  %s1416_s12 = sphi %s1509_s12, %s2128_s12  }
  0x15   : > { %2078 = sst [smem:[#allocation16_spill]] %s1448_s20  ;;  %s2049_s29 = sadd.s32 4294967295, %s1476_s27  }
  0x16   : > { %2079 = sst [smem:[#allocation17_spill]] %s1456_s22  ;;  %p1589_p0 = scmp.ge.s32.totalorder %s38_s28, 2 }
  0x17   : > { %2080 = sst [smem:[#allocation18_spill]] %s1464_s24  ;;  %p61_p1 = scmp.ne.s32.totalorder %s1448_s20, %s1444_s19 }
  0x18   : > { %2081 = sst [smem:[#allocation19_spill]] %s1468_s25  ;;  %s2138_s28 = smov (%p1589_p0, %s38_s28), 0 }
  0x19   : > { %2082 = sst [smem:[#allocation20_spill]] %s1472_s26  ;;  %p2055_p2 = scmp.eq.s32.totalorder %s1476_s27, 0 }
  0x1a   : > { %2084 = sst [smem:[#allocation21_spill]] %s2138_s28  ;;  %p67_p3 = scmp.ne.s32.totalorder %s1444_s19, %s1440_s18 }
  0x1b   : > { %p1605_p4 = scmp.eq.s32.totalorder %s2049_s29, 0  ;;  %s1611_s7 = ssub.s32 %s1464_s24, %s2138_s28 }
  0x1c   : > { %p63_p5 = por %p2055_p2, %p61_p1  ;;  %p2054_p7 = scmp.lt.s32.totalorder %s1476_s27, 8 }
  0x1d   : > { %s2085_s6 = scalar_select %p1605_p4, 1, 0 }
  0x1e   : > { %p1617_p6 = por %p1605_p4, %p67_p3  ;;  %s175_s9 = sand.u32 1, %s1448_s20  }
  0x1f   : > { %s936_s10 = sshll.u32 %s175_s9, 6  ;;  %s976_s11 = sshll.u32 %s1472_s26, 5 }
  0x20   : > { %s2086_s8 = scalar_select %p1617_p6, 1, 0 }
  0x21   : > { %s185_s18 = sadd.s32 %s1464_s24, %s976_s11  ;;  %s179_s5 = scalar_lea.vmem [#allocation3], %s936_s10 }
  0x22   : > { %s188_s4 = sshll.u32 %s179_s5, 4  ;;  %s939_s29 = sshll.u32 %s185_s18, 6  ;;  %s1625_s4 = int_to_ptr.vmem [resolvable:$true] %s188_s4 }
  0x23   : > { %s2087_s0 = sld [smem:[#allocation26_spill]]  ;;  %p1634_p8 = pnand %p2054_p7, %p63_p5 }
  0x24   : > { %s1638_s5 = scalar_lea.sflag [#allocation4], %s175_s9 }
  0x25   : > { %p1220_p10 = pneg %p1634_p8 }
  0x29   : > { %s1630_s2 = scalar_lea.hbm %s2087_s0, %s939_s29  ;;  %s1223_s29 = scalar_lea.hbm %s2087_s0, 4096 }
  0x2a   : > { %s1218_s10 = scalar_lea.hbm %s1630_s2, 1024  ;;  %p1224_p13 = scmp.lt.u32.totalorder %s1630_s2, %s2087_s0 }
  0x2b   : > { %p1219_p9 = scmp.ne.s32.totalorder %s1630_s2, %s1218_s10  ;;  %p1225_p1 = scmp.lt.u32.totalorder %s1223_s29, %s1218_s10 }
  0x2c   : > { %p1227_p5 = scmp.lt.u32.totalorder %s1218_s10, %s1630_s2 }
  0x2d   : > { %p1221_p11 = pnand %p1220_p10, %p1219_p9  ;;  %p1226_p3 = por %p1225_p1, %p1224_p13 }
  0x2f   : > { %p1222_p12 = pneg %p1221_p11  ;;  %p1228_p7 = por %p1227_p5, %p1226_p3 }
  0x31   : > { %p1229_p2 = pnand %p1228_p7, %p1222_p12 }
  0x33   : > { %1232 = shalt.err (!%p1229_p2)
}
  0x34   : > { %s1233_s9 = scalar_lea.vmem %s1625_s4, 1024  ;;  %s1478_s3 = smov [#allocation3]  }
  0x35   : > { %p1234_p9 = scmp.ne.s32.totalorder %s1625_s4, %s1233_s9  ;;  %s1238_s28 = sshll.u32 %s1478_s3, 4  ;;  %s1239_s28 = int_to_ptr.vmem [resolvable:$false] %s1238_s28 }
  0x36   : > { %s1240_s11 = scalar_lea.vmem %s1239_s28, 2048  ;;  %p1241_p4 = scmp.lt.s32.totalorder %s1625_s4, %s1239_s28 }
  0x37   : > { %p1236_p11 = pnand %p1234_p9, %p1220_p10  ;;  %p1242_p13 = scmp.lt.s32.totalorder %s1240_s11, %s1233_s9 }
  0x39   : > { %p1237_p6 = pneg %p1236_p11  ;;  %p1243_p1 = por %p1242_p13, %p1241_p4 }
  0x3b   : > { %p1244_p3 = pnand %p1243_p1, %p1237_p6 }
  0x3d   : > { %1247 = shalt.err (!%p1244_p3)
}
  0x3e   : > { %s2058_s10 = smov 128   ;;  %s2059_s29 = smov 64  }
  0x3f   : > { %s2060_s18 = smov 4   ;;  %p944_p2 = scmp.ge.s32.totalorder %s1476_s27, 1 }
  0x40   : > { %1054 = dma.hbm_to_vmem [thread:$0]  (!%p1634_p8), %s1630_s2, 1024, %s1625_s4, %s1638_s5, %s2058_s10, %s2059_s29, %s2060_s18  }
  0x41   : > { %p219_p4 = scmp.lt.s32.totalorder %s1476_s27, 9  ;;  %s2089_s9 = sadd.s32 4294967295, %s1476_s27  }
  0x42   : > { %p1673_p6 = scmp.eq.s32.totalorder %s2089_s9, 7  ;;  %s933_s22 = sadd.s32 4294967294, %s1476_s27  }
  0x43   : > { %p1677_p7 = pnand %p944_p2, %p219_p4  ;;  %s41_s11 = sadd.s32 1, %s1468_s25 }
  0x44   : > { %s2140_s11 = smov (!%p1589_p0, %s41_s11), %s1468_s25  ;;  %s82_s2 = sadd.s32 1, %s1436_s17 }
  0x45   : > { %p95_p8 = scmp.ne.s32.totalorder %s1432_s16, %s1428_s15  ;;  %p43_p10 = scmp.ge.s32.totalorder %s2140_s11, 2 }
  0x46   : > { %p89_p12 = scmp.ne.s32.totalorder %s1436_s17, %s1432_s16  ;;  %p2092_p5 = scmp.ne.s32.totalorder %s2085_s6, 0 }
  0x47   : > { %s110_s5 = sadd.s32 1, %s1424_s14  ;;  %s2142_s11 = smov (%p43_p10, %s2140_s11), 0 }
  0x48   : > { %p1693_p9 = por %p95_p8, %p2092_p5  ;;  %2094 = sst [smem:[#allocation22_spill]] %s2142_s11 }
  0x49   : > { %s2095_s9 = sadd.s32 1, %s1472_s26  ;;  %s78_s30 = ssub.s32 %s1468_s25, %s2142_s11 }
  0x4a   : > { %s2093_s4 = scalar_select %p1693_p9, 1, 0 }
  0x4b   : > { %s2144_s9 = smov (!%p43_p10, %s2095_s9), %s1472_s26  ;;  %p120_p0 = scmp.ne.s32.totalorder %s1424_s14, %s1420_s13 }
  0x4c   : > { %p47_p11 = scmp.ge.s32.totalorder %s2144_s9, 2  ;;  %s79_s15 = sor.u32 %s78_s30, %s1611_s7 }
  0x4d   : > { %p80_p13 = scmp.eq.s32.totalorder %s79_s15, 0  ;;  %p1710_p1 = por %p1673_p6, %p120_p0 }
  0x4e   : > { %s2146_s9 = smov (%p47_p11, %s2144_s9), 0  ;;  %p126_p3 = scmp.ne.s32.totalorder %s1420_s13, %s1416_s12 }
  0x4f   : > { %s2096_s6 = scalar_select %p1710_p1, 1, 0 }
  0x50   : > { %2098 = sst [smem:[#allocation24_spill]] %s2146_s9  ;;  %s49_s29 = ssub.s32 %s1472_s26, %s2146_s9 }
  0x51   : > { %2097 = sst [smem:[#allocation23_spill]] %s2096_s6  ;;  %s51_s18 = sor.u32 %s1611_s7, %s49_s29 }
  0x52   : > { %s1717_s10 = scalar_select %p80_p13, %s1436_s17, %s82_s2  }
  0x53   : > { %s107_s0 = sor.u32 %s78_s30, %s49_s29  ;;  %p52_p2 = scmp.eq.s32.totalorder %s51_s18, 0 }
  0x54   : > { %p108_p4 = scmp.eq.s32.totalorder %s107_s0, 0  ;;  %p127_p8 = scmp.eq.s32.totalorder %s933_s22, 7 }
  0x55   : > { %s198_s3 = sand.u32 1, %s1436_s17   ;;  %s2099_s15 = sadd.s32 1, %s1448_s20 }
  0x56   : > { %s1728_s11 = scalar_select %p52_p2, %s1448_s20, %s2099_s15  }
  0x57   : > { %s1731_s6 = scalar_select %p108_p4, %s1424_s14, %s110_s5  }
  0x58   : > { %2100 = sst [smem:[#allocation25_spill]] %s1728_s11  ;;  %p2101_p6 = scmp.eq.s32.totalorder %s1476_s27, 0 }
  0x59   : > { %p1738_p5 = por %p127_p8, %p126_p3  ;;  %s940_s9 = sshll.u32 %s198_s3, 6 }
  0x5a   : > { %p91_p10 = por %p89_p12, %p2101_p6  ;;  %s977_s7 = sshll.u32 %s1464_s24, 5 }
  0x5b   : > { %s2102_s2 = scalar_select %p1738_p5, 1, 0 }
  0x5c   : > { %s208_s29 = sadd.s32 %s1468_s25, %s977_s7  ;;  %s202_s30 = scalar_lea.vmem [#allocation6], %s940_s9 }
  0x5d   : > { %s943_s18 = sshll.u32 %s208_s29, 6  ;;  %s211_s0 = sshll.u32 %s202_s30, 4  ;;  %s1749_s0 = int_to_ptr.vmem [resolvable:$true] %s211_s0 }
  0x5e   : > { %s2103_s1 = sld [smem:[#allocation27_spill]]  ;;  %p2104_p12 = scmp.lt.s32.totalorder %s1476_s27, 8 }
  0x5f   : > { %s1757_s9 = scalar_lea.sflag [#allocation7], %s198_s3 }
  0x60   : > { %p1753_p0 = pnand %p2104_p12, %p91_p10 }
  0x62   : > { %p1250_p13 = pneg %p1753_p0 }
  0x64   : > { %s1747_s15 = scalar_lea.hbm %s2103_s1, %s943_s18  ;;  %s1253_s18 = scalar_lea.hbm %s2103_s1, 4096 }
  0x65   : > { %s1248_s7 = scalar_lea.hbm %s1747_s15, 1024  ;;  %p1254_p4 = scmp.lt.u32.totalorder %s1747_s15, %s2103_s1 }
  0x66   : > { %p1249_p11 = scmp.ne.s32.totalorder %s1747_s15, %s1248_s7  ;;  %p1255_p8 = scmp.lt.u32.totalorder %s1253_s18, %s1248_s7 }
  0x67   : > { %p1257_p10 = scmp.lt.u32.totalorder %s1248_s7, %s1747_s15 }
  0x68   : > { %p1251_p3 = pnand %p1250_p13, %p1249_p11  ;;  %p1256_p6 = por %p1255_p8, %p1254_p4 }
  0x6a   : > { %p1252_p2 = pneg %p1251_p3  ;;  %p1258_p12 = por %p1257_p10, %p1256_p6 }
  0x6c   : > { %p1259_p5 = pnand %p1258_p12, %p1252_p2 }
  0x6e   : > { %1262 = shalt.err (!%p1259_p5)
}
  0x6f   : > { %s1263_s3 = scalar_lea.vmem %s1749_s0, 1024  ;;  %s1482_s26 = smov [#allocation6]  }
  0x70   : > { %p1264_p11 = scmp.ne.s32.totalorder %s1749_s0, %s1263_s3  ;;  %s1268_s29 = sshll.u32 %s1482_s26, 4  ;;  %s1269_s29 = int_to_ptr.vmem [resolvable:$false] %s1268_s29 }
  0x71   : > { %s1270_s30 = scalar_lea.vmem %s1269_s29, 2048  ;;  %p1271_p9 = scmp.lt.s32.totalorder %s1749_s0, %s1269_s29 }
  0x72   : > { %p1266_p3 = pnand %p1264_p11, %p1250_p13  ;;  %p1272_p4 = scmp.lt.s32.totalorder %s1270_s30, %s1263_s3 }
  0x74   : > { %p1267_p1 = pneg %p1266_p3  ;;  %p1273_p8 = por %p1272_p4, %p1271_p9 }
  0x76   : > { %p1274_p6 = pnand %p1273_p8, %p1267_p1 }
  0x78   : > { %1277 = shalt.err (!%p1274_p6)
}
  0x79   : > { %s2106_s7 = smov 4   ;;  %s2107_s18 = smov 64  }
  0x7a   : > { %s2108_s22 = smov 128   ;;  %223 = sbr.rel (%p1677_p7) target bundleno = 507 (0x1fb), region = 28 }
  0x7b   : > { %1057 = dma.hbm_to_vmem [thread:$0]  (!%p1753_p0), %s1747_s15, 1024, %s1749_s0, %s1757_s9, %s2108_s22, %s2107_s18, %s2106_s7  }
  0x7c   : > { %s225_s26 = sand.u32 (!%p1677_p7), 1, %s1444_s19   ;;  %p2109_p9 = scmp.ne.s32.totalorder (!%p1677_p7), %s2086_s8, 0 }
  0x7d   : > { %s945_s29 = sshll.u32 (!%p1677_p7), %s225_s26, 6  ;;  %s226_s3 = scalar_lea.sflag (!%p1677_p7), [#allocation4], %s225_s26 }
  0x7e   : > { %s1791_s30 = scalar_lea.vmem (!%p1677_p7), [#allocation3], %s945_s29 }
  0x81   : > { %1399 = dma.done.wait (%p2109_p9), %s226_s3, 1024  }
  0x82   : > { %1401 = vsyncadd (%p2109_p9), %s226_s3, 4294966272  ;;  %s234_s5 = sand.u32 1, %s1432_s16   ;;  %p2110_p7 = scmp.ne.s32.totalorder %s2093_s4, 0 }
  0x83   : > { %s946_s1 = sshll.u32 %s234_s5, 6  ;;  %s235_s0 = scalar_lea.sflag [#allocation7], %s234_s5 }
  0x84   : > { %s1798_s15 = scalar_lea.vmem [#allocation6], %s946_s1 }
  0x85   : > { %1403 = dma.done.wait (%p2110_p7), %s235_s0, 1024  }
  0x86   : > { %1405 = vsyncadd (%p2110_p7), %s235_s0, 4294966272  ;;  %s1805_s28 = sand.u32 1, %s1420_s13   ;;  %p949_p1 = scmp.ne.s32.totalorder %s1452_s21, 0 }
  0x87   : > { %s947_s9 = sshll.u32 %s1805_s28, 7  ;;  %s948_s8 = sshll.u32 %s1805_s28, 2  ;;  %v1483_v0 = vmov (!%p949_p1), 0.0  }
  0x88   : > { %s1809_s7 = scalar_lea.vmem [#allocation8], %s947_s9  ;;  %s1811_s18 = scalar_lea.vmem [#allocation9], %s948_s8  ;;  %279 = vst [vmem:[#allocation2] sm:$0xff] (!%p949_p1), %v1483_v0  ;;  %280 = vst [vmem:[#allocation2 + $0x8] sm:$0xff] (!%p949_p1), %v1483_v0 }
  0x89   : > { %278 = sbr.rel (%p949_p1) target bundleno = 144 (0x90), region = 40  ;;  %281 = vst [vmem:[#allocation2 + $0x10] sm:$0xff] (!%p949_p1), %v1483_v0  ;;  %282 = vst [vmem:[#allocation2 + $0x18] sm:$0xff] (!%p949_p1), %v1483_v0 }
  0x8a   : > { %283 = vst [vmem:[#allocation2 + $0x20] sm:$0xff] (!%p949_p1), %v1483_v0  ;;  %284 = vst [vmem:[#allocation2 + $0x28] sm:$0xff] (!%p949_p1), %v1483_v0 }
  0x8b   : > { %285 = vst [vmem:[#allocation2 + $0x30] sm:$0xff] (!%p949_p1), %v1483_v0  ;;  %286 = vst [vmem:[#allocation2 + $0x38] sm:$0xff] (!%p949_p1), %v1483_v0 }
  0x8c   : > { %287 = vst [vmem:[#allocation2 + $0x40] sm:$0xff] (!%p949_p1), %v1483_v0  ;;  %288 = vst [vmem:[#allocation2 + $0x48] sm:$0xff] (!%p949_p1), %v1483_v0 }
  0x8d   : > { %289 = vst [vmem:[#allocation2 + $0x50] sm:$0xff] (!%p949_p1), %v1483_v0  ;;  %290 = vst [vmem:[#allocation2 + $0x58] sm:$0xff] (!%p949_p1), %v1483_v0 }
  0x8e   : > { %291 = vst [vmem:[#allocation2 + $0x60] sm:$0xff] (!%p949_p1), %v1483_v0  ;;  %292 = vst [vmem:[#allocation2 + $0x68] sm:$0xff] (!%p949_p1), %v1483_v0 }
  0x8f   : > { %293 = vst [vmem:[#allocation2 + $0x70] sm:$0xff] (!%p949_p1), %v1483_v0  ;;  %294 = vst [vmem:[#allocation2 + $0x78] sm:$0xff] (!%p949_p1), %v1483_v0 }
  0x90 PF: > { %v1202_v1 = vld [vmem:[%s1798_s15] sm:$0xff]   ;;  %v1203_v2 = vld [vmem:[%s1798_s15 + $0x8] sm:$0xff]   ;;  %v1204_v3 = vld [vmem:[%s1798_s15 + $0x10] sm:$0xff]   ;;  %p966_p5 = scmp.ne.s32.totalorder %s1452_s21, 1 }
  0x91   : > { %995 = vmatprep.subr.bf16.mxu0 %v1202_v1  ;;  %1027 = vmatprep.subr.bf16.mxu1 %v1202_v1  ;;  %v1205_v4 = vld [vmem:[%s1798_s15 + $0x18] sm:$0xff]   ;;  %v1210_v5 = vld [vmem:[%s1791_s30] sm:$0xff]   ;;  %v1207_v8 = vld [vmem:[%s1798_s15 + $0x28] sm:$0xff]   ;;  %vm736_vm0 = vcmask (!%p966_p5), 1040384   ;;  %vm738_vm1 = vcmask (!%p966_p5), 1041408   ;;  %vm740_vm2 = vcmask (!%p966_p5), 1042432  }
  0x92   : > { %996 = vmatpush3.bf16.msra.mxu0 %v1202_v1  ;;  %1035 = vmatpush3.bf16.msra.mxu1 %v1202_v1  ;;  %v1211_v6 = vld [vmem:[%s1791_s30 + $0x20] sm:$0xff]   ;;  %v1208_v9 = vld [vmem:[%s1798_s15 + $0x30] sm:$0xff]   ;;  %v1209_v10 = vld [vmem:[%s1798_s15 + $0x38] sm:$0xff]  }
  0x93   : > { %997 = vmatprep.subr.bf16.mxu0 %v1203_v2  ;;  %1028 = vmatprep.subr.bf16.mxu1 %v1203_v2  ;;  %v1206_v7 = vld [vmem:[%s1798_s15 + $0x20] sm:$0xff]   ;;  %v1212_v11 = vld [vmem:[%s1791_s30 + $0x8] sm:$0xff]   ;;  %v1214_v13 = vld [vmem:[%s1791_s30 + $0x10] sm:$0xff]  }
  0x94   : > { %1011 = vmatprep.mubr.bf16.mxu0 %v1210_v5  ;;  %1019 = vmatprep.mubr.bf16.mxu1 %v1211_v6  ;;  %v1213_v12 = vld [vmem:[%s1791_s30 + $0x28] sm:$0xff]   ;;  %v1215_v14 = vld [vmem:[%s1791_s30 + $0x30] sm:$0xff]   ;;  %v1216_v15 = vld [vmem:[%s1791_s30 + $0x18] sm:$0xff]  }
  0x95   : > { %v1217_v16 = vld [vmem:[%s1791_s30 + $0x38] sm:$0xff]   ;;  %v297_v17 = vld [vmem:[#allocation2 + $0x10] sm:$0xff]  ;;  %v295_v19 = vld [vmem:[#allocation2] sm:$0xff] }
  0x96   : > { %998 = vmatpush3.bf16.msra.mxu0 %v1203_v2  ;;  %1036 = vmatpush3.bf16.msra.mxu1 %v1203_v2  ;;  %v305_v18 = vld [vmem:[#allocation2 + $0x50] sm:$0xff]  ;;  %v303_v20 = vld [vmem:[#allocation2 + $0x40] sm:$0xff]  ;;  %v298_v23 = vld [vmem:[#allocation2 + $0x18] sm:$0xff] }
  0x97   : > { %999 = vmatprep.subr.bf16.mxu0 %v1204_v3  ;;  %1029 = vmatprep.subr.bf16.mxu1 %v1204_v3  ;;  %v306_v24 = vld [vmem:[#allocation2 + $0x58] sm:$0xff]  ;;  %v296_v29 = vld [vmem:[#allocation2 + $0x8] sm:$0xff]  ;;  %v301_v41 = vld [vmem:[#allocation2 + $0x30] sm:$0xff] }
  0x98   : > { %v304_v30 = vld [vmem:[#allocation2 + $0x48] sm:$0xff]  ;;  %v309_v42 = vld [vmem:[#allocation2 + $0x70] sm:$0xff]  ;;  %v299_v43 = vld [vmem:[#allocation2 + $0x20] sm:$0xff] }
  0x99   : > { %v307_v44 = vld [vmem:[#allocation2 + $0x60] sm:$0xff]  ;;  %v302_v47 = vld [vmem:[#allocation2 + $0x38] sm:$0xff]  ;;  %v300_v53 = vld [vmem:[#allocation2 + $0x28] sm:$0xff] }
  0x9a   : > { %1000 = vmatpush3.bf16.msra.mxu0 %v1204_v3  ;;  %1037 = vmatpush3.bf16.msra.mxu1 %v1204_v3  ;;  %v310_v48 = vld [vmem:[#allocation2 + $0x78] sm:$0xff]  ;;  %v308_v54 = vld [vmem:[#allocation2 + $0x68] sm:$0xff] }
  0x9b   : > { %1001 = vmatprep.subr.bf16.mxu0 %v1205_v4  ;;  %1030 = vmatprep.subr.bf16.mxu1 %v1205_v4 }
  0x9e   : > { %1002 = vmatpush3.bf16.msra.mxu0 %v1205_v4  ;;  %1038 = vmatpush3.bf16.msra.mxu1 %v1205_v4 }
  0x9f   : > { %1003 = vmatprep.subr.bf16.mxu0 %v1206_v7  ;;  %1031 = vmatprep.subr.bf16.mxu1 %v1206_v7 }
  0xa2   : > { %1004 = vmatpush3.bf16.msra.mxu0 %v1206_v7  ;;  %1039 = vmatpush3.bf16.msra.mxu1 %v1206_v7 }
  0xa3   : > { %1005 = vmatprep.subr.bf16.mxu0 %v1207_v8  ;;  %1032 = vmatprep.subr.bf16.mxu1 %v1207_v8 }
  0xa6   : > { %1006 = vmatpush3.bf16.msra.mxu0 %v1207_v8  ;;  %1040 = vmatpush3.bf16.msra.mxu1 %v1207_v8 }
  0xa7   : > { %1007 = vmatprep.subr.bf16.mxu0 %v1208_v9  ;;  %1033 = vmatprep.subr.bf16.mxu1 %v1208_v9 }
  0xaa   : > { %1008 = vmatpush3.bf16.msra.mxu0 %v1208_v9  ;;  %1041 = vmatpush3.bf16.msra.mxu1 %v1208_v9 }
  0xab   : > { %1009 = vmatprep.subr.bf16.mxu0 %v1209_v10  ;;  %1034 = vmatprep.subr.bf16.mxu1 %v1209_v10 }
  0xae   : > { %1010 = vmatpush3.bf16.msra.mxu0 %v1209_v10  ;;  %1042 = vmatpush3.bf16.msra.mxu1 %v1209_v10 }
  0xb1   : > { %1012 = vmatmul.mubr.bf16.vlgmr.msra.gmra.mrb[0].mxu0 %v1212_v11  ;;  %1020 = vmatmul.mubr.bf16.vlgmr.msra.gmra.mrb[0].mxu1 %v1213_v12 }
  0xb2   : > { %1015 = vmatprep.mubr.bf16.mxu0 %v1214_v13  ;;  %1023 = vmatprep.mubr.bf16.mxu1 %v1215_v14 }
  0xb9   : > { %1016 = vmatmul.mubr.bf16.gmra.mrb[4].mxu0 %v1216_v15  ;;  %1024 = vmatmul.mubr.bf16.gmra.mrb[4].mxu1 %v1217_v16 }
 0x184   : > { %v1013_v21 = vpop.f32.mrb[0].mxu0  ;;  %v1021_v22 = vpop.f32.mrb[0].mxu1 }
 0x185   : > { %v538_v25 = vadd.f32 %v1013_v21, %v297_v17  ;;  %v546_v26 = vadd.f32 %v1021_v22, %v305_v18  ;;  %v473_v27 = vpop.f32.mrb[1].mxu0  ;;  %v505_v28 = vpop.f32.mrb[1].mxu1 }
 0x186   : > { %v536_v31 = vadd.f32 %v473_v27, %v295_v19  ;;  %v544_v32 = vadd.f32 %v505_v28, %v303_v20  ;;  %v1014_v33 = vpop.f32.mrb[2].mxu0  ;;  %v1022_v34 = vpop.f32.mrb[2].mxu1 }
 0x187   : > { %554 = vst [vmem:[#allocation2 + $0x10] sm:$0xff] %v538_v25  ;;  %562 = vst [vmem:[#allocation2 + $0x50] sm:$0xff] %v546_v26  ;;  %v539_v35 = vadd.f32 %v1014_v33, %v298_v23  ;;  %v547_v36 = vadd.f32 %v1022_v34, %v306_v24  ;;  %v476_v37 = vpop.f32.mrb[3].mxu0  ;;  %v508_v38 = vpop.f32.mrb[3].mxu1 }
 0x188   : > { %552 = vst [vmem:[#allocation2] sm:$0xff] %v536_v31  ;;  %560 = vst [vmem:[#allocation2 + $0x40] sm:$0xff] %v544_v32  ;;  %v537_v39 = vadd.f32 %v476_v37, %v296_v29  ;;  %v545_v40 = vadd.f32 %v508_v38, %v304_v30 }
 0x189   : > { %555 = vst [vmem:[#allocation2 + $0x18] sm:$0xff] %v539_v35  ;;  %563 = vst [vmem:[#allocation2 + $0x58] sm:$0xff] %v547_v36 }
 0x18a   : > { %553 = vst [vmem:[#allocation2 + $0x8] sm:$0xff] %v537_v39  ;;  %561 = vst [vmem:[#allocation2 + $0x48] sm:$0xff] %v545_v40 }
 0x18c   : > { %v1017_v45 = vpop.f32.mrb[4].mxu0  ;;  %v1025_v46 = vpop.f32.mrb[4].mxu1  ;;  %571 = sbr.rel (%p966_p5) target bundleno = 451 (0x1c3), region = 44 }
 0x18d   : > { %v542_v49 = vadd.f32 %v1017_v45, %v301_v41  ;;  %v550_v50 = vadd.f32 %v1025_v46, %v309_v42  ;;  %v489_v51 = vpop.f32.mrb[5].mxu0  ;;  %v521_v52 = vpop.f32.mrb[5].mxu1 }
 0x18e   : > { %v540_v55 = vadd.f32 %v489_v51, %v299_v43  ;;  %v548_v56 = vadd.f32 %v521_v52, %v307_v44  ;;  %v1018_v57 = vpop.f32.mrb[6].mxu0  ;;  %v1026_v58 = vpop.f32.mrb[6].mxu1  ;;  %v574_v3 = vld [vmem:[#allocation2 + $0x10] sm:$0xff] (!%p966_p5) }
 0x18f   : > { %558 = vst [vmem:[#allocation2 + $0x30] sm:$0xff] %v542_v49  ;;  %566 = vst [vmem:[#allocation2 + $0x70] sm:$0xff] %v550_v50  ;;  %v543_v59 = vadd.f32 %v1018_v57, %v302_v47  ;;  %v551_v60 = vadd.f32 %v1026_v58, %v310_v48  ;;  %v492_v61 = vpop.f32.mrb[7].mxu0  ;;  %v524_v62 = vpop.f32.mrb[7].mxu1  ;;  %v572_v1 = vld [vmem:[#allocation2] sm:$0xff] (!%p966_p5)  ;;  %v606_v14 = vmul.f32 (!%p966_p5), %v574_v3, %v574_v3  ;;  %v701_v20 = vmax.f32 (!%p966_p5), %v574_v3, 0.0 }
 0x190   : > { %556 = vst [vmem:[#allocation2 + $0x20] sm:$0xff] %v540_v55  ;;  %564 = vst [vmem:[#allocation2 + $0x60] sm:$0xff] %v548_v56  ;;  %v541_v63 = vadd.f32 %v492_v61, %v300_v53  ;;  %v549_v0 = vadd.f32 %v524_v62, %v308_v54  ;;  %v604_v4 = vmul.f32 (!%p966_p5), %v572_v1, %v572_v1  ;;  %v641_v5 = vand.u32 (!%p966_p5), 2147483647, %v572_v1  ;;  %v575_v8 = vld [vmem:[#allocation2 + $0x18] sm:$0xff] (!%p966_p5)  ;;  %v1842_v17 = vld [vmem:[#allocation2 + $0x40] sm:$0xff] (!%p966_p5) }
 0x191   : > { %559 = vst [vmem:[#allocation2 + $0x38] sm:$0xff] %v543_v59  ;;  %567 = vst [vmem:[#allocation2 + $0x78] sm:$0xff] %v551_v60  ;;  %v573_v2 = vld [vmem:[#allocation2 + $0x8] sm:$0xff] (!%p966_p5)  ;;  %v699_v6 = vmax.f32 (!%p966_p5), %v572_v1, 0.0  ;;  %v643_v19 = vand.u32 (!%p966_p5), 2147483647, %v574_v3  ;;  %v607_v21 = vmul.f32 (!%p966_p5), %v575_v8, %v575_v8 }
 0x192   : > { %557 = vst [vmem:[#allocation2 + $0x28] sm:$0xff] %v541_v63  ;;  %565 = vst [vmem:[#allocation2 + $0x68] sm:$0xff] %v549_v0  ;;  %v605_v7 = vmul.f32 (!%p966_p5), %v573_v2, %v573_v2  ;;  %v642_v11 = vand.u32 (!%p966_p5), 2147483647, %v573_v2  ;;  %v678_v12 = vadd.f32 (!%p966_p5), %v573_v2, %v572_v1  ;;  %v700_v13 = vmax.f32 (!%p966_p5), %v573_v2, 0.0  ;;  %v1849_v22 = vld [vmem:[#allocation2 + $0x48] sm:$0xff] (!%p966_p5) }
 0x193   : > { %588 = vst [vmem:[%s1809_s7] sm:$0xff] %v572_v1  ;;  %589 = vst [vmem:[%s1809_s7 + $0x8] sm:$0xff] %v573_v2  ;;  %v1851_v23 = vld [vmem:[#allocation2 + $0x50] sm:$0xff]  ;;  %v1853_v24 = vld [vmem:[#allocation2 + $0x58] sm:$0xff]  ;;  %v644_v28 = vand.u32 2147483647, %v575_v8  ;;  %v702_v33 = vmax.f32 %v575_v8, 0.0  ;;  %v612_v63 = vmul.f32 %v1842_v17, %v1842_v17 }
 0x194   : > { %590 = vst [vmem:[%s1809_s7 + $0x10] sm:$0xff] %v574_v3  ;;  %591 = vst [vmem:[%s1809_s7 + $0x18] sm:$0xff] %v575_v8  ;;  %v620_v18 = vadd.f32 %v605_v7, %v604_v4  ;;  %v657_v25 = vadd.f32 %v642_v11, %v641_v5  ;;  %v715_v26 = vadd.f32 %v700_v13, %v699_v6  ;;  %v649_v0 = vand.u32 2147483647, %v1842_v17 }
 0x195   : > { %596 = vst [vmem:[%s1809_s7 + $0x40] sm:$0xff] %v1842_v17  ;;  %v679_v27 = vadd.f32 %v678_v12, %v574_v3  ;;  %597 = vst [vmem:[%s1809_s7 + $0x48] sm:$0xff] %v1849_v22  ;;  %v707_v4 = vmax.f32 %v1842_v17, 0.0  ;;  %v613_v6 = vmul.f32 %v1849_v22, %v1849_v22  ;;  %v650_v7 = vand.u32 2147483647, %v1849_v22 }
 0x196   : > { %v578_v15 = vld [vmem:[#allocation2 + $0x30] sm:$0xff]  ;;  %598 = vst [vmem:[%s1809_s7 + $0x50] sm:$0xff] %v1851_v23  ;;  %599 = vst [vmem:[%s1809_s7 + $0x58] sm:$0xff] %v1853_v24  ;;  %v621_v32 = vadd.f32 %v620_v18, %v606_v14  ;;  %v658_v37 = vadd.f32 %v657_v25, %v643_v19  ;;  %v716_v38 = vadd.f32 %v715_v26, %v701_v20  ;;  %v708_v11 = vmax.f32 %v1849_v22, 0.0 }
 0x197   : > { %v576_v9 = vld [vmem:[#allocation2 + $0x20] sm:$0xff]  ;;  %594 = vst [vmem:[%s1809_s7 + $0x30] sm:$0xff] %v578_v15  ;;  %v1865_v31 = vld [vmem:[#allocation2 + $0x70] sm:$0xff]  ;;  %v680_v39 = vadd.f32 %v679_v27, %v575_v8  ;;  %v610_v49 = vmul.f32 %v578_v15, %v578_v15  ;;  %v647_v50 = vand.u32 2147483647, %v578_v15  ;;  %v705_v54 = vmax.f32 %v578_v15, 0.0 }
 0x198   : > { %592 = vst [vmem:[%s1809_s7 + $0x20] sm:$0xff] %v576_v9  ;;  %v1840_v16 = vld [vmem:[#allocation2 + $0x38] sm:$0xff]  ;;  %v1861_v29 = vld [vmem:[#allocation2 + $0x60] sm:$0xff]  ;;  %v608_v34 = vmul.f32 %v576_v9, %v576_v9  ;;  %v645_v35 = vand.u32 2147483647, %v576_v9  ;;  %602 = vst [vmem:[%s1809_s7 + $0x70] sm:$0xff] %v1865_v31  ;;  %v622_v41 = vadd.f32 %v621_v32, %v607_v21  ;;  %v659_v44 = vadd.f32 %v658_v37, %v644_v28 }
 0x199   : > { %v1834_v10 = vld [vmem:[#allocation2 + $0x28] sm:$0xff]  ;;  %595 = vst [vmem:[%s1809_s7 + $0x38] sm:$0xff] %v1840_v16  ;;  %600 = vst [vmem:[%s1809_s7 + $0x60] sm:$0xff] %v1861_v29  ;;  %v1873_v36 = vld [vmem:[#allocation2 + $0x78] sm:$0xff]  ;;  %v703_v40 = vmax.f32 %v576_v9, 0.0  ;;  %v717_v45 = vadd.f32 %v716_v38, %v702_v33  ;;  %v681_v46 = vadd.f32 %v680_v39, %v576_v9  ;;  %v611_v56 = vmul.f32 %v1840_v16, %v1840_v16 }
 0x19a   : > { %593 = vst [vmem:[%s1809_s7 + $0x28] sm:$0xff] %v1834_v10  ;;  %v1863_v30 = vld [vmem:[#allocation2 + $0x68] sm:$0xff]  ;;  %603 = vst [vmem:[%s1809_s7 + $0x78] sm:$0xff] %v1873_v36  ;;  %v609_v42 = vmul.f32 %v1834_v10, %v1834_v10  ;;  %v646_v43 = vand.u32 2147483647, %v1834_v10  ;;  %v704_v47 = vmax.f32 %v1834_v10, 0.0  ;;  %v623_v48 = vadd.f32 %v622_v41, %v608_v34 }
 0x19b   : > { %601 = vst [vmem:[%s1809_s7 + $0x68] sm:$0xff] %v1863_v30  ;;  %v660_v51 = vadd.f32 %v659_v44, %v645_v35  ;;  %v718_v52 = vadd.f32 %v717_v45, %v703_v40  ;;  %v682_v53 = vadd.f32 %v681_v46, %v1834_v10  ;;  %v648_v57 = vand.u32 2147483647, %v1840_v16 }
 0x19c   : > { %v624_v55 = vadd.f32 %v623_v48, %v609_v42  ;;  %v706_v61 = vmax.f32 %v1840_v16, 0.0  ;;  %v614_v13 = vmul.f32 %v1851_v23, %v1851_v23  ;;  %v651_v14 = vand.u32 2147483647, %v1851_v23 }
 0x19d   : > { %v661_v58 = vadd.f32 %v660_v51, %v646_v43  ;;  %v719_v59 = vadd.f32 %v718_v52, %v704_v47  ;;  %v683_v60 = vadd.f32 %v682_v53, %v578_v15  ;;  %v709_v19 = vmax.f32 %v1851_v23, 0.0 }
 0x19e   : > { %v625_v62 = vadd.f32 %v624_v55, %v610_v49  ;;  %v615_v21 = vmul.f32 %v1853_v24, %v1853_v24  ;;  %v710_v28 = vmax.f32 %v1853_v24, 0.0  ;;  %v616_v33 = vmul.f32 %v1861_v29, %v1861_v29 }
 0x19f   : > { %v662_v1 = vadd.f32 %v661_v58, %v647_v50  ;;  %v720_v2 = vadd.f32 %v719_v59, %v705_v54  ;;  %v684_v3 = vadd.f32 %v683_v60, %v1840_v16  ;;  %v711_v38 = vmax.f32 %v1861_v29, 0.0 }
 0x1a0   : > { %v626_v5 = vadd.f32 %v625_v62, %v611_v56  ;;  %v617_v40 = vmul.f32 %v1863_v30, %v1863_v30  ;;  %v712_v44 = vmax.f32 %v1863_v30, 0.0  ;;  %v618_v46 = vmul.f32 %v1865_v31, %v1865_v31 }
 0x1a1   : > { %v663_v8 = vadd.f32 %v662_v1, %v648_v57  ;;  %v721_v9 = vadd.f32 %v720_v2, %v706_v61  ;;  %v685_v10 = vadd.f32 %v684_v3, %v1842_v17  ;;  %v652_v17 = vand.u32 2147483647, %v1853_v24 }
 0x1a2   : > { %v627_v12 = vadd.f32 %v626_v5, %v612_v63  ;;  %v713_v50 = vmax.f32 %v1865_v31, 0.0  ;;  %v619_v52 = vmul.f32 %v1873_v36, %v1873_v36  ;;  %v714_v56 = vmax.f32 %v1873_v36, 0.0 }
 0x1a3   : > { %v664_v15 = vadd.f32 %v663_v8, %v649_v0  ;;  %v722_v16 = vadd.f32 %v721_v9, %v707_v4  ;;  %v686_v18 = vadd.f32 %v685_v10, %v1849_v22  ;;  %v653_v22 = vand.u32 2147483647, %v1861_v29 }
 0x1a4   : > { %v628_v20 = vadd.f32 %v627_v12, %v613_v6 }
 0x1a5   : > { %v665_v25 = vadd.f32 %v664_v15, %v650_v7  ;;  %v723_v26 = vadd.f32 %v722_v16, %v708_v11  ;;  %v687_v27 = vadd.f32 %v686_v18, %v1851_v23  ;;  %v654_v23 = vand.u32 2147483647, %v1863_v30 }
 0x1a6   : > { %v629_v32 = vadd.f32 %v628_v20, %v614_v13 }
 0x1a7   : > { %v666_v34 = vadd.f32 %v665_v25, %v651_v14  ;;  %v724_v35 = vadd.f32 %v723_v26, %v709_v19  ;;  %v688_v37 = vadd.f32 %v687_v27, %v1853_v24  ;;  %v655_v24 = vand.u32 2147483647, %v1865_v31 }
 0x1a8   : > { %v630_v39 = vadd.f32 %v629_v32, %v615_v21 }
 0x1a9   : > { %v667_v41 = vadd.f32 %v666_v34, %v652_v17  ;;  %v725_v42 = vadd.f32 %v724_v35, %v710_v28  ;;  %v689_v43 = vadd.f32 %v688_v37, %v1861_v29  ;;  %v656_v29 = vand.u32 2147483647, %v1873_v36 }
 0x1aa   : > { %v631_v45 = vadd.f32 %v630_v39, %v616_v33 }
 0x1ab   : > { %v668_v47 = vadd.f32 %v667_v41, %v653_v22  ;;  %v726_v48 = vadd.f32 %v725_v42, %v711_v38  ;;  %v690_v49 = vadd.f32 %v689_v43, %v1863_v30 }
 0x1ac   : > { %v632_v51 = vadd.f32 %v631_v45, %v617_v40 }
 0x1ad   : > { %v669_v53 = vadd.f32 %v668_v47, %v654_v23  ;;  %v727_v54 = vadd.f32 %v726_v48, %v712_v44  ;;  %v691_v55 = vadd.f32 %v690_v49, %v1865_v31 }
 0x1ae   : > { %v633_v57 = vadd.f32 %v632_v51, %v618_v46 }
 0x1af   : > { %v670_v58 = vadd.f32 %v669_v53, %v655_v24  ;;  %v692_v59 = vadd.f32 %v691_v55, %v1873_v36  ;;  %v728_v60 = vadd.f32 %v727_v54, %v713_v50 }
 0x1b0   : > { %v634_v30 = vadd.f32 %v633_v57, %v619_v52 }
 0x1b1   : > { %v671_v61 = vadd.f32 %v670_v58, %v656_v29  ;;  %v693_v62 = vrot.slane %v692_v59, 4  ;;  %v729_v63 = vadd.f32 %v728_v60, %v714_v56 }
 0x1b2   : > { %v635_v0 = vrot.slane %v634_v30, 4 }
 0x1b3   : > { %v672_v1 = vrot.slane %v671_v61, 4  ;;  %v694_v2 = vadd.f32 %v693_v62, %v692_v59  ;;  %v730_v3 = vrot.slane %v729_v63, 4 }
 0x1b4   : > { %v636_v4 = vadd.f32 %v635_v0, %v634_v30 }
 0x1b5   : > { %v673_v5 = vadd.f32 %v672_v1, %v671_v61  ;;  %v695_v6 = vrot.slane %v694_v2, 2  ;;  %v731_v7 = vadd.f32 %v730_v3, %v729_v63 }
 0x1b6   : > { %v637_v31 = vrot.slane %v636_v4, 2 }
 0x1b7   : > { %v674_v8 = vrot.slane %v673_v5, 2  ;;  %v696_v9 = vadd.f32 %v695_v6, %v694_v2  ;;  %v732_v10 = vrot.slane %v731_v7, 2 }
 0x1b8   : > { %v638_v11 = vadd.f32 %v637_v31, %v636_v4 }
 0x1b9   : > { %v675_v12 = vadd.f32 %v674_v8, %v673_v5  ;;  %v697_v36 = vrot.slane %v696_v9, 1  ;;  %v733_v13 = vadd.f32 %v732_v10, %v731_v7 }
 0x1ba   : > { %v639_v14 = vrot.slane %v638_v11, 1 }
 0x1bb   : > { %v676_v15 = vrot.slane %v675_v12, 1  ;;  %v734_v16 = vrot.slane %v733_v13, 1  ;;  %v698_v19 = vadd.f32 %v697_v36, %v696_v9 }
 0x1bc   : > { %v640_v18 = vadd.f32 %v639_v14, %v638_v11 }
 0x1bd   : > { %v677_v20 = vadd.f32 %v676_v15, %v675_v12  ;;  %v735_v21 = vadd.f32 %v734_v16, %v733_v13 }
 0x1bf   : > { %v737_v17 = vsel %vm736_vm0, %v640_v18, %v677_v20 }
 0x1c0   : > { %v739_v25 = vsel %vm738_vm1, %v737_v17, %v698_v19 }
 0x1c1   : > { %v741_v26 = vsel %vm740_vm2, %v739_v25, %v735_v21 }
 0x1c2   : > { %742 = vst [vmem:[%s1811_s18] sm:$0xf] %v741_v26 }
 0x1c3 PF: > { %s2111_s1 = sld [smem:[#allocation17_spill]]  ;;  %s2112_s21 = sld [smem:[#allocation23_spill]] }
 0x1c4   : > { %s978_s4 = sshll.u32 %s1460_s23, 5  ;;  %s764_s26 = sshll.u32 %s1809_s7, 4  ;;  %s1931_s26 = int_to_ptr.vmem [resolvable:$true] %s764_s26 }
 0x1c5   : > { %s2113_s5 = sld [smem:[#allocation28_spill]]  ;;  %s744_s15 = scalar_lea.sflag [#allocation5], %s1805_s28 }
 0x1c6   : > { %s1278_s9 = scalar_lea.vmem %s1931_s26, 2048  ;;  %s1484_s8 = smov [#allocation8]  }
 0x1c7   : > { %p1279_p0 = scmp.ne.s32.totalorder %s1931_s26, %s1278_s9 }
 0x1c9   : > { %s761_s22 = sadd.s32 %s2111_s1, %s978_s4  ;;  %p2114_p13 = scmp.ne.s32.totalorder %s2112_s21, 0 }
 0x1ca   : > { %s971_s29 = sshll.u32 %s761_s22, 7  ;;  %s1282_s4 = sshll.u32 %s1484_s8, 4  ;;  %s1283_s4 = int_to_ptr.vmem [resolvable:$false] %s1282_s4 }
 0x1cb   : > { %s1936_s0 = scalar_lea.hbm %s2113_s5, %s971_s29  ;;  %p1280_p2 = pnand %p1279_p0, %p2114_p13 }
 0x1cc   : > { %s1284_s7 = scalar_lea.vmem %s1283_s4, 4096  ;;  %p1285_p12 = scmp.lt.s32.totalorder %s1931_s26, %s1283_s4 }
 0x1cd   : > { %p1281_p10 = pneg %p1280_p2  ;;  %p1286_p11 = scmp.lt.s32.totalorder %s1284_s7, %s1278_s9 }
 0x1cf   : > { %p1287_p3 = por %p1286_p11, %p1285_p12 }
 0x1d1   : > { %p1288_p4 = pnand %p1287_p3, %p1281_p10 }
 0x1d3   : > { %1291 = shalt.err (!%p1288_p4)
}
 0x1d4   : > { %s1292_s22 = scalar_lea.hbm %s1936_s0, 2048  ;;  %s1296_s30 = scalar_lea.hbm %s2113_s5, 8192 }
 0x1d5   : > { %p1293_p8 = scmp.ne.s32.totalorder %s1936_s0, %s1292_s22  ;;  %p1297_p7 = scmp.lt.u32.totalorder %s1936_s0, %s2113_s5 }
 0x1d6   : > { %p1298_p1 = scmp.lt.u32.totalorder %s1296_s30, %s1292_s22  ;;  %p1300_p0 = scmp.lt.u32.totalorder %s1292_s22, %s1936_s0 }
 0x1d7   : > { %p1294_p6 = pnand %p1293_p8, %p2114_p13 }
 0x1d8   : > { %p1299_p5 = por %p1298_p1, %p1297_p7 }
 0x1d9   : > { %p1295_p9 = pneg %p1294_p6 }
 0x1da   : > { %p1301_p2 = por %p1300_p0, %p1299_p5 }
 0x1dc   : > { %p1302_p10 = pnand %p1301_p2, %p1295_p9 }
 0x1de   : > { %1305 = shalt.err (!%p1302_p10)
}
 0x1df   : > { %s1485_s9 = smov 128   ;;  %s1486_s7 = smov 256  }
 0x1e0   : > { %s1487_s29 = smov 8   ;;  %s972_s3 = sshll.u32 %s1460_s23, 1 }
 0x1e1   : > { %1047 = dma.vmem_to_hbm [thread:$0]  (%p2114_p13), %s1931_s26, 2048, %s1936_s0, %s744_s15, %s1485_s9, %s1486_s7, %s1487_s29  }
 0x1e2   : > { %s778_s22 = sadd.s32 %s2111_s1, %s972_s3  ;;  %s782_s30 = sshll.u32 %s1811_s18, 4  ;;  %s1965_s30 = int_to_ptr.vmem [resolvable:$true] %s782_s30 }
 0x1e3   : > { %s973_s8 = sshll.u32 %s778_s22, 6  ;;  %s2115_s25 = sld [smem:[#allocation29_spill]] }
 0x1e4   : > { %s749_s20 = scalar_lea.sflag [#allocation10], %s1805_s28  ;;  %s1306_s19 = scalar_lea.vmem %s1965_s30, 64 }
 0x1e5   : > { %p1307_p12 = scmp.ne.s32.totalorder %s1965_s30, %s1306_s19  ;;  %s1488_s26 = smov [#allocation9]  }
 0x1e6   : > { %s1310_s23 = sshll.u32 %s1488_s26, 4  ;;  %s1311_s23 = int_to_ptr.vmem [resolvable:$false] %s1310_s23 }
 0x1e7   : > { %p1308_p11 = pnand %p1307_p12, %p2114_p13  ;;  %s1312_s18 = scalar_lea.vmem %s1311_s23, 128 }
 0x1e8   : > { %p1313_p4 = scmp.lt.s32.totalorder %s1965_s30, %s1311_s23  ;;  %p1314_p8 = scmp.lt.s32.totalorder %s1312_s18, %s1306_s19 }
 0x1e9   : > { %s2116_s11 = smov %s2115_s25  ;;  %s780_s24 = scalar_lea.hbm %s2115_s25, %s973_s8 }
 0x1ea   : > { %p1309_p3 = pneg %p1308_p11  ;;  %p1315_p6 = por %p1314_p8, %p1313_p4 }
 0x1ec   : > { %p1316_p9 = pnand %p1315_p6, %p1309_p3 }
 0x1ee   : > { %1319 = shalt.err (!%p1316_p9)
}
 0x1ef   : > { %s1320_s1 = scalar_lea.hbm %s780_s24, 64  ;;  %s1324_s5 = scalar_lea.hbm %s2116_s11, 256 }
 0x1f0   : > { %p1321_p7 = scmp.ne.s32.totalorder %s780_s24, %s1320_s1  ;;  %p1325_p0 = scmp.lt.u32.totalorder %s780_s24, %s2116_s11 }
 0x1f1   : > { %p1326_p2 = scmp.lt.u32.totalorder %s1324_s5, %s1320_s1  ;;  %p1328_p12 = scmp.lt.u32.totalorder %s1320_s1, %s780_s24 }
 0x1f2   : > { %p1322_p1 = pnand %p1321_p7, %p2114_p13 }
 0x1f3   : > { %p1327_p10 = por %p1326_p2, %p1325_p0 }
 0x1f4   : > { %p1323_p5 = pneg %p1322_p1 }
 0x1f5   : > { %p1329_p11 = por %p1328_p12, %p1327_p10 }
 0x1f7   : > { %p1330_p3 = pnand %p1329_p11, %p1323_p5 }
 0x1f9   : > { %1333 = shalt.err (!%p1330_p3)
}
 0x1fa   : > { %1048 = dma.vmem_to_hbm [thread:$0]  (%p2114_p13), %s1965_s30, 64, %s780_s24, %s749_s20  }
 0x1fb PF: > { %p1066_p4 = scmp.ge.s32.totalorder %s1476_s27, 2  ;;  %s794_s19 = sand.u32 1, %s1416_s12  }
 0x1fc   : > { %p2117_p8 = scmp.ne.s32.totalorder %s2102_s2, 0  ;;  %s795_s9 = scalar_lea.sflag [#allocation5], %s794_s19 }
 0x1fe   : > { %p1059_p6 = pnand %p1066_p4, %p2117_p8 }
 0x200   : > { %1407 = dma.done.wait (!%p1059_p6), %s795_s9, 2048  }
 0x201   : > { %1409 = vsyncadd (!%p1059_p6), %s795_s9, 4294965248  ;;  %s804_s7 = scalar_lea.sflag [#allocation10], %s794_s19 }
 0x202   : > { %1411 = dma.done.wait (!%p1059_p6), %s804_s7, 64  }
 0x203   : > { %1413 = vsyncadd (!%p1059_p6), %s804_s7, 4294967232  ;;  %s26_s27 = sadd.s32 1, %s1476_s27   ;;  %s2119_s18 = sld [smem:[#allocation15_spill]] }
 0x204   : > { %p1992_p9 = scmp.ge.s32.totalorder %s26_s27, 10   ;;  %s2120_s19 = sld [smem:[#allocation16_spill]] }
 0x205   : > { %s2121_s20 = sld [smem:[#allocation25_spill]]  ;;  %s2122_s24 = sld [smem:[#allocation18_spill]] }
 0x206   : > { %s2123_s22 = sld [smem:[#allocation19_spill]]  ;;  %s2124_s23 = sld [smem:[#allocation20_spill]] }
 0x207   : > { %s2125_s2 = sld [smem:[#allocation21_spill]]  ;;  %s2126_s25 = sld [smem:[#allocation22_spill]] }
 0x208   : > { %s2127_s26 = sld [smem:[#allocation24_spill]]  ;;  %s2128_s12 = smov %s1420_s13 }
 0x209   : > { %s2130_s13 = smov %s1424_s14  ;;  %s2131_s14 = smov %s1731_s6 }
 0x20a   : > { %s2132_s15 = smov %s1432_s16  ;;  %s2133_s16 = smov %s1436_s17 }
 0x20b   : > { %s2134_s17 = smov %s1717_s10  ;;  %s2135_s21 = smov %s2122_s24 }
 0x20c   :  { %25 = sbr.rel (!%p1992_p9) target bundleno = 20 (0x14), region = 111 }
 0x20d   : > { %s2136_s24 = smov %s2125_s2 }
 0x213   :  { %809 = vsyncpa [#allocation4], 1 }
 0x214   :  { %811 = vsyncpa [#allocation4 + $0x1], 1 }
 0x215   :  { %812 = vsyncpa [#allocation7], 1 }
 0x216   :  { %814 = vsyncpa [#allocation7 + $0x1], 1 }
 0x217   :  { %815 = vsyncpa [#allocation5], 1 }
 0x218   :  { %817 = vsyncpa [#allocation5 + $0x1], 1 }
 0x219   :  { %818 = vsyncpa [#allocation10], 1 }
 0x21a   :  { %820 = vsyncpa [#allocation10 + $0x1], 1 }

</bundles_post_ra>
